<compile_context>
chip_gen: v7x
topology: tpu7x:2x2x1
jax: 0.10.0
libtpu: 0.0.40
codegen_flags: <defaults>
</compile_context>

<pallas_src>
import jax
import jax.numpy as jnp
from jax.experimental import pallas as pl
from jax.experimental.pallas import tpu as pltpu

_LANES = 1024                            # lane-dense slab width (multiple of 128)
_TARGET_BLOCK_BYTES = 2 * 1024 * 1024    # ~2 MiB per block (mem-bound sweet spot)


def _sigmoid_kernel(x_ref, o_ref):
    # Elementwise sigmoid on the whole VMEM tile.
    # exp() goes to the EUP; add/div are VPU ops. Weakly-typed literals keep
    # the math in the input dtype (bf16 stays bf16 on v6e/v7x).
    x = x_ref[...]
    o_ref[...] = (1.0 / (1.0 + jnp.exp(-x))).astype(o_ref.dtype)


def _sigmoid_2d(x2d, tile_rows):
    """Run the Pallas sigmoid kernel over a lane-dense [R, _LANES] array."""
    R, L = x2d.shape
    assert L == _LANES and R % tile_rows == 0 and tile_rows % 8 == 0
    grid = (R // tile_rows,)
    return pl.pallas_call(
        _sigmoid_kernel,
        out_shape=jax.ShapeDtypeStruct((R, L), x2d.dtype),
        grid_spec=pltpu.PrefetchScalarGridSpec(
            num_scalar_prefetch=0,
            grid=grid,
            in_specs=[pl.BlockSpec((tile_rows, L), lambda i: (i, 0))],
            out_specs=pl.BlockSpec((tile_rows, L), lambda i: (i, 0)),
        ),
        compiler_params=pltpu.CompilerParams(
            dimension_semantics=("parallel",),
            vmem_limit_bytes=32 * 1024 * 1024,
        ),
    )(x2d)


def active_forward(x):
    """Pallas equivalent of Active.forward: returns sigmoid(x).

    x: NCHW (or any shape) float array. Output has identical shape/dtype.
    """
    orig_shape = x.shape
    n = x.size
    itemsize = jnp.dtype(x.dtype).itemsize

    # Rows per block targeting ~2 MiB; multiple of 8 (and of 16 for bf16,
    # since 2 MiB / (1024 lanes * 2 B) = 1024 rows).
    target_rows = max(8, (_TARGET_BLOCK_BYTES // (_LANES * itemsize)) // 8 * 8)

    rows_needed = pl.cdiv(n, _LANES)
    tile_rows = min(target_rows, pl.cdiv(rows_needed, 8) * 8)
    rows = pl.cdiv(rows_needed, tile_rows) * tile_rows   # pad rows to tile multiple
    n_pad = rows * _LANES

    flat = x.reshape(-1)
    if n_pad != n:
        flat = jnp.pad(flat, (0, n_pad - n))
    y2d = _sigmoid_2d(flat.reshape(rows, _LANES), tile_rows)

    y = y2d.reshape(-1)
    if n_pad != n:
        y = y[:n]
    return y.reshape(orig_shape)


if __name__ == "__main__":
    key = jax.random.PRNGKey(0)
    # Small NCHW input, consistent with the activation-tutorial module.
    x = jax.random.normal(key, (2, 4, 16, 16), dtype=jnp.float32)

    y = active_forward(x)
    jax.block_until_ready(y)

    # Sanity check against the pure-JAX reference.
    y_ref = jax.nn.sigmoid(x)
    assert y.shape == x.shape and y.dtype == x.dtype
    assert jnp.max(jnp.abs(y - y_ref)) < 1e-6

    print("KERNEL_OK")
</pallas_src>

<mosaic_0001>
module attributes {stable_mosaic.version = 11 : i64} {
  func.func @_sigmoid_kernel(%arg0: i32, %arg1: memref<8x1024xf32, #tpu.memory_space<vmem>>, %arg2: memref<8x1024xf32, #tpu.memory_space<vmem>>) attributes {dimension_semantics = [#tpu.dimension_semantics<parallel>], iteration_bounds = array<i64: 1>, scalar_prefetch = 0 : i64, scratch_operands = 0 : i64, tpu.core_type = #tpu.core_type<tc>, window_params = [{transform_indices = @transform_0, window_bounds = array<i64: 8, 1024>}, {transform_indices = @transform_1, window_bounds = array<i64: 8, 1024>}]} {
    %c0 = arith.constant 0 : index
    %c0_0 = arith.constant 0 : index
    %0 = vector.load %arg1[%c0, %c0_0] : memref<8x1024xf32, #tpu.memory_space<vmem>>, vector<8x1024xf32>
    %cst = arith.constant 0.000000e+00 : f32
    %1 = vector.broadcast %cst : f32 to vector<8x1024xf32>
    %2 = arith.subf %1, %0 : vector<8x1024xf32>
    %3 = math.exp %2 : vector<8x1024xf32>
    %cst_1 = arith.constant 1.000000e+00 : f32
    %4 = vector.broadcast %cst_1 : f32 to vector<8x1024xf32>
    %5 = arith.addf %4, %3 : vector<8x1024xf32>
    %cst_2 = arith.constant 1.000000e+00 : f32
    %6 = vector.broadcast %cst_2 : f32 to vector<8x1024xf32>
    %7 = arith.divf %6, %5 : vector<8x1024xf32>
    %c0_3 = arith.constant 0 : index
    %c0_4 = arith.constant 0 : index
    %8 = vector.load %arg2[%c0_3, %c0_4] : memref<8x1024xf32, #tpu.memory_space<vmem>>, vector<8x1024xf32>
    tpu.vector_store %arg2[%c0_3, %c0_4], %7 {strides = array<i32>} : memref<8x1024xf32, #tpu.memory_space<vmem>>, vector<8x1024xf32>,
    return
  }
  func.func @transform_0(%arg0: i32) -> (i32, i32) {
    %c0_i32 = arith.constant 0 : i32
    %c0_i32_0 = arith.constant 0 : i32
    return %arg0, %c0_i32 : i32, i32
  }
  func.func @transform_1(%arg0: i32) -> (i32, i32) {
    %c0_i32 = arith.constant 0 : i32
    %c0_i32_0 = arith.constant 0 : i32
    return %arg0, %c0_i32 : i32, i32
  }
}

</mosaic_0001>

<bundles_post_ra>
// kernel: tpu_custom_call.1
= control target key start
LH: loop header
LB: loop body
LE: loop exit
PB: predicated region body
PF: predicated region fallthrough
CT: control target
= control target key end

     0   :  { %6 = vsyncpa [#allocation3], 0  ;;  %s218_s0 = inlined_call_operand.hbm [shape: f32[8,1024], index: 0, kind: input, shape index: {}]   ;;  %s219_s1 = inlined_call_operand.hbm [shape: f32[8,1024], index: 1, kind: output, shape index: {}]  }
   0x1   :  { %7 = vsyncpa [#allocation4], 0  ;;  %s182_s6 = smov [#allocation2]   ;;  %s134_s10 = scalar_lea.hbm %s218_s0, 1024 }
   0x2   :  { %s14_s7 = sshll.u32 %s182_s6, 4  ;;  %p135_p0 = scmp.ne.s32.totalorder %s218_s0, %s134_s10  ;;  %s15_s7 = int_to_ptr.vmem [resolvable:$true] %s14_s7 }
   0x3   :  { %p138_p1 = scmp.lt.u32.totalorder %s134_s10, %s218_s0 }
   0x5   :  { %p140_p2 = pnand %p138_p1, %p135_p0 }
   0x7   :  { %143 = shalt.err (!%p140_p2)
}
   0x8   :  { %s144_s15 = scalar_lea.vmem %s15_s7, 1024  ;;  %p149_p4 = scmp.lt.s32.totalorder %s15_s7, %s15_s7 }
   0x9   :  { %p145_p3 = scmp.ne.s32.totalorder %s15_s7, %s144_s15  ;;  %p150_p5 = scmp.lt.s32.totalorder %s144_s15, %s144_s15 }
   0xb   :  { %p151_p6 = por %p150_p5, %p149_p4 }
   0xd   :  { %p152_p7 = pnand %p151_p6, %p145_p3 }
   0xf   :  { %155 = shalt.err (!%p152_p7)
}
  0x10   :  { %17 = dma.hbm_to_vmem [thread:$0]  %s218_s0, 1024, %s15_s7, [#allocation3]  }
  0x11   :  { %178 = dma.done.wait [#allocation3], 1024  }
  0x12   :  { %179 = vsyncadd [#allocation3], 4294966272  ;;  %v21_v0 = vld [vmem:[#allocation2] sm:$0xff]  ;;  %v22_v1 = vld [vmem:[#allocation2 + $0x8] sm:$0xff]  ;;  %s183_s0 = smov [#allocation5]  }
  0x13   :  { %v23_v2 = vld [vmem:[#allocation2 + $0x10] sm:$0xff]  ;;  %v29_v3 = vsub.f32 0.0, %v21_v0  ;;  %v30_v4 = vsub.f32 0.0, %v22_v1  ;;  %v24_v6 = vld [vmem:[#allocation2 + $0x18] sm:$0xff]  ;;  %v25_v7 = vld [vmem:[#allocation2 + $0x20] sm:$0xff]  ;;  %s91_s18 = sshll.u32 %s183_s0, 4  ;;  %s92_s18 = int_to_ptr.vmem [resolvable:$true] %s91_s18 }
  0x14   :  { %v31_v5 = vsub.f32 0.0, %v23_v2  ;;  %v26_v8 = vld [vmem:[#allocation2 + $0x28] sm:$0xff]  ;;  %v32_v9 = vsub.f32 0.0, %v24_v6  ;;  %v33_v10 = vsub.f32 0.0, %v25_v7  ;;  %v27_v12 = vld [vmem:[#allocation2 + $0x30] sm:$0xff]  ;;  %v28_v13 = vld [vmem:[#allocation2 + $0x38] sm:$0xff]  ;;  %p161_p9 = scmp.lt.s32.totalorder %s92_s18, %s92_s18 }
  0x15   :  { %v34_v11 = vsub.f32 0.0, %v26_v8  ;;  %v37_v14 = vmul.f32 1.442695, %v29_v3  ;;  %v39_v15 = vmul.f32 1.442695, %v30_v4  ;;  %v35_v19 = vsub.f32 0.0, %v27_v12 }
  0x16   :  { %v41_v16 = vmul.f32 1.442695, %v31_v5  ;;  %v43_v17 = vmul.f32 1.442695, %v32_v9  ;;  %v45_v18 = vmul.f32 1.442695, %v33_v10 }
  0x17   :  { %102 = vpow2.f32 %v37_v14  ;;  %v36_v20 = vsub.f32 0.0, %v28_v13  ;;  %v47_v21 = vmul.f32 1.442695, %v34_v11  ;;  %v49_v22 = vmul.f32 1.442695, %v35_v19  ;;  %s156_s19 = scalar_lea.vmem %s92_s18, 1024 }
  0x18   :  { %104 = vpow2.f32 %v39_v15  ;;  %p157_p8 = scmp.ne.s32.totalorder %s92_s18, %s156_s19  ;;  %p162_p10 = scmp.lt.s32.totalorder %s156_s19, %s156_s19 }
  0x19   :  { %106 = vpow2.f32 %v41_v16  ;;  %v51_v23 = vmul.f32 1.442695, %v36_v20 }
  0x1a   :  { %108 = vpow2.f32 %v43_v17  ;;  %p163_p11 = por %p162_p10, %p161_p9 }
  0x1b   :  { %110 = vpow2.f32 %v45_v18 }
  0x1c   :  { %112 = vpow2.f32 %v47_v21  ;;  %p164_p12 = pnand %p163_p11, %p157_p8 }
  0x1d   :  { %114 = vpow2.f32 %v49_v22 }
  0x1e   :  { %116 = vpow2.f32 %v51_v23 }
  0x21   :  { %v103_v24 = vpop.eup %102 }
  0x22   :  { %v105_v25 = vpop.eup %104  ;;  %v53_v26 = vadd.f32 1.0, %v103_v24 }
  0x23   :  { %v107_v27 = vpop.eup %106  ;;  %v54_v28 = vadd.f32 1.0, %v105_v25 }
  0x24   :  { %v109_v29 = vpop.eup %108  ;;  %118 = vrcp.f32 %v53_v26  ;;  %v55_v30 = vadd.f32 1.0, %v107_v27 }
  0x25   :  { %v111_v31 = vpop.eup %110  ;;  %120 = vrcp.f32 %v54_v28  ;;  %v56_v32 = vadd.f32 1.0, %v109_v29 }
  0x26   :  { %v113_v33 = vpop.eup %112  ;;  %122 = vrcp.f32 %v55_v30  ;;  %v57_v34 = vadd.f32 1.0, %v111_v31 }
  0x27   :  { %v115_v35 = vpop.eup %114  ;;  %124 = vrcp.f32 %v56_v32  ;;  %v58_v36 = vadd.f32 1.0, %v113_v33 }
  0x28   :  { %v117_v37 = vpop.eup %116  ;;  %126 = vrcp.f32 %v57_v34  ;;  %v59_v38 = vadd.f32 1.0, %v115_v35 }
  0x29   :  { %128 = vrcp.f32 %v58_v36  ;;  %v60_v39 = vadd.f32 1.0, %v117_v37 }
  0x2a   :  { %130 = vrcp.f32 %v59_v38 }
  0x2b   :  { %132 = vrcp.f32 %v60_v39 }
  0x2e   :  { %v119_v40 = vpop.eup %118 }
  0x2f   :  { %v121_v41 = vpop.eup %120  ;;  %77 = vst [vmem:[#allocation5] sm:$0xff] %v119_v40 }
  0x30   :  { %v123_v42 = vpop.eup %122  ;;  %78 = vst [vmem:[#allocation5 + $0x8] sm:$0xff] %v121_v41 }
  0x31   :  { %v125_v43 = vpop.eup %124  ;;  %79 = vst [vmem:[#allocation5 + $0x10] sm:$0xff] %v123_v42 }
  0x32   :  { %v127_v44 = vpop.eup %126  ;;  %80 = vst [vmem:[#allocation5 + $0x18] sm:$0xff] %v125_v43 }
  0x33   :  { %v129_v45 = vpop.eup %128  ;;  %81 = vst [vmem:[#allocation5 + $0x20] sm:$0xff] %v127_v44 }
  0x34   :  { %v131_v46 = vpop.eup %130  ;;  %82 = vst [vmem:[#allocation5 + $0x28] sm:$0xff] %v129_v45 }
  0x35   :  { %v133_v47 = vpop.eup %132  ;;  %83 = vst [vmem:[#allocation5 + $0x30] sm:$0xff] %v131_v46 }
  0x36   :  { %84 = vst [vmem:[#allocation5 + $0x38] sm:$0xff] %v133_v47 }
  0x37   :  { %167 = shalt.err (!%p164_p12)
}
  0x38   :  { %s168_s22 = scalar_lea.hbm %s219_s1, 1024 }
  0x39   :  { %p169_p13 = scmp.ne.s32.totalorder %s219_s1, %s168_s22  ;;  %p172_p0 = scmp.lt.u32.totalorder %s168_s22, %s219_s1 }
  0x3b   :  { %p174_p1 = pnand %p172_p0, %p169_p13 }
  0x3d   :  { %177 = shalt.err (!%p174_p1)
}
  0x3e   :  { %94 = dma.vmem_to_hbm [thread:$0]  %s92_s18, 1024, %s219_s1, [#allocation4]  }
  0x3f   :  { %180 = dma.done.wait [#allocation4], 1024  }
  0x40   :  { %181 = vsyncadd [#allocation4], 4294966272 }
  0x41   :  { %98 = vsyncpa [#allocation3], 1 }
  0x42   :  { %99 = vsyncpa [#allocation4], 1 }

</bundles_post_ra>
